<compile_context>
chip_gen: v6e
topology: v6e:2x2x1
jax: 0.10.0
libtpu: 0.0.40
codegen_flags: <defaults>
</compile_context>

<pallas_src>
import functools

import numpy as np
import jax
import jax.numpy as jnp
from jax.experimental import pallas as pl
from jax.experimental.pallas import tpu as pltpu


# ----------------------------------------------------------------------------
# Pallas kernel: per-channel separable causal 2-D convolution + D*u skip
# ----------------------------------------------------------------------------
def _s42d_conv_kernel(d_ref, u_ref, t0_ref, t1bd_ref, o_ref):
    step = pl.program_id(0)
    ct = u_ref.shape[0]                       # static channels-per-step
    for i in range(ct):                       # static unroll (CT is small)
        c = step * ct + i
        d = d_ref[c]                          # per-channel skip scale (SMEM scalar)
        u_c = u_ref[i]                        # (H, B*W)   bf16
        # conv along H: one (H, H) @ (H, B*W) MXU pass, f32 accumulation
        tmp = jnp.dot(t0_ref[i], u_c, preferred_element_type=jnp.float32)
        # conv along W: one (H, B*W) @ (B*W, B*W) pass against blockdiag_b(T1^T)
        y = jnp.dot(tmp.astype(jnp.bfloat16), t1bd_ref[i],
                    preferred_element_type=jnp.float32)
        o_ref[i] = y + d * u_c.astype(jnp.float32)    # skip connection add in f32


def _pick_channels_per_step(n_channels, per_channel_bytes, vmem_budget=8 << 20):
    """Largest divisor of C that still leaves >= 2 grid steps (v7x: 2 TensorCores)
    and keeps the double-buffered per-step block set under a conservative budget
    (well inside v7x's 32 MiB scoped / 64 MiB physical VMEM)."""
    best = 1
    for ct in range(1, max(1, n_channels // 2) + 1):
        if n_channels % ct == 0 and 2 * ct * per_channel_bytes <= vmem_budget:
            best = ct
    return best


def s42d_convolve_pallas(u_nhwc, t0, t1t, d_vec, channels_per_step=None):
    """u_nhwc: [B, H, W, C] float32 -> [B, H, W, C] float32."""
    B, H, W, C = u_nhwc.shape
    BW = B * W

    # channel-major activations: u_r[c, h, b*W + w] = u[b, h, w, c]
    # TODO(synk): for stacked S4ND layers keep activations in this channel-major layout
    #             across layers (fuse/hoist the permute) instead of a transpose per call.
    u_r = jnp.transpose(u_nhwc, (3, 1, 0, 2)).reshape(C, H, BW)

    # batch-block-diagonal transposed width-Toeplitz: t1bd[c, b'*W+w', b*W+w] =
    # (b==b') * T1t[c, w', w]   -> shape (C, B*W, B*W)
    eye_b = jnp.eye(B, dtype=t1t.dtype)
    t1bd = (eye_b[None, :, None, :, None] * t1t[:, None, :, None, :]).reshape(C, BW, BW)

    # bf16 MXU operands; f32 accumulation / skip handled inside the kernel.
    u_bf = u_r.astype(jnp.bfloat16)
    t0_bf = t0.astype(jnp.bfloat16)
    t1bd_bf = t1bd.astype(jnp.bfloat16)

    per_channel_bytes = (H * BW * (2 + 4)                 # u (bf16) + out (f32)
                         + H * H * 2 + BW * BW * 2)       # T0 + blockdiag(T1^T) (bf16)
    ct = (_pick_channels_per_step(C, per_channel_bytes)
          if channels_per_step is None else channels_per_step)
    assert C % ct == 0, (C, ct)

    out = pl.pallas_call(
        _s42d_conv_kernel,
        out_shape=jax.ShapeDtypeStruct((C, H, BW), jnp.float32),
        grid=(C // ct,),
        in_specs=[
            pl.BlockSpec(memory_space=pltpu.MemorySpace.SMEM),        # D: (C,) scalars
            pl.BlockSpec((ct, H, BW), lambda s: (s, 0, 0)),           # u, CT channels
            pl.BlockSpec((ct, H, H), lambda s: (s, 0, 0)),            # T0[c..]
            pl.BlockSpec((ct, BW, BW), lambda s: (s, 0, 0)),          # blockdiag_b(T1^T)
        ],
        out_specs=pl.BlockSpec((ct, H, BW), lambda s: (s, 0, 0)),
        compiler_params=pltpu.CompilerParams(
            dimension_semantics=("parallel",)),   # channel-step axis across v7x's 2 TCs
    )(d_vec.astype(jnp.float32), u_bf, t0_bf, t1bd_bf)

    return jnp.transpose(out.reshape(C, H, B, W), (2, 1, 3, 0))       # back to NHWC


# ----------------------------------------------------------------------------
# S4 1-D kernel construction (glue, plain JAX).
# TODO(synk): the generating-function kernel construction (complex Cauchy dot + ifft)
#             has no Pallas TPU equivalent (complex dtypes / FFT unsupported); kept in JAX.
# ----------------------------------------------------------------------------
def _make_omega_l(l):
    return jnp.exp(-2j * jnp.pi * jnp.arange(l) / l).astype(jnp.complex64)


def _cauchy_dot(v, denominator):
    # denominator: (d, L, n). v may be (n,), (d, n) or (d, 1, n) -> broadcast & reduce n.
    if v.ndim == 1:
        v = v[None, None, :]
    elif v.ndim == 2:
        v = v[:, None, :]
    return (v / denominator).sum(-1)


def _compute_roots(p, q, lam, omega_l, B, Ct, log_step):
    a0, a1 = jnp.conj(Ct), jnp.conj(q)
    b0, b1 = B, p
    step = jnp.exp(log_step)
    g = jnp.outer(2.0 / step, (1.0 - omega_l) / (1.0 + omega_l))     # (d, L)
    c = 2.0 / (1.0 + omega_l)                                        # (L,)
    denom = g[..., None] - lam                                       # (d, L, n)
    k00 = _cauchy_dot(a0 * b0, denom)
    k01 = _cauchy_dot(a0 * b1, denom)
    k10 = _cauchy_dot(a1 * b0, denom)
    k11 = _cauchy_dot(a1 * b1, denom)
    return c * (k00 - k01 * (1.0 / (1.0 + k11)) * k10)


def _compute_kernel_1d(p, q, lam, B, Ct, log_step, l):
    omega_l = _make_omega_l(l)
    at_roots = _compute_roots(p, q, lam, omega_l, B, Ct, log_step)   # (d, l) complex
    out = jnp.fft.ifft(at_roots, n=l, axis=-1)
    order = np.array([x if x == 0 else l - x for x in range(l)], dtype=np.int32)
    return out[:, order].real.astype(jnp.float32)                    # (d, l)


def _causal_toeplitz(k):
    """k: (C, L) -> T: (C, L, L) with T[c, i, j] = k[c, i-j] for i >= j else 0."""
    _, L = k.shape
    i = jnp.arange(L)[:, None]
    j = jnp.arange(L)[None, :]
    idx = i - j
    mask = idx >= 0
    gathered = k[:, jnp.where(mask, idx, 0)]                         # (C, L, L)
    return jnp.where(mask[None], gathered, 0.0).astype(jnp.float32)


# ----------------------------------------------------------------------------
# Forward pass (mirrors S42DLayer.forward): convolve(u, K) + D * u
# Note: materialized Toeplitz matrices scale as O(H^2 W + H W^2); fine for moderate
# spatial sizes, would eventually lose to the FFT path for very large H, W.
# ----------------------------------------------------------------------------
def s42d_forward(params, u, seq_shape):
    H, W = seq_shape
    k0 = _compute_kernel_1d(l=H, **params["d0"])                     # (C, H)
    k1 = _compute_kernel_1d(l=W, **params["d1"])                     # (C, W)
    T0 = _causal_toeplitz(k0)                                        # (C, H, H)
    T1t = jnp.transpose(_causal_toeplitz(k1), (0, 2, 1))             # (C, W, W)
    return s42d_convolve_pallas(u, T0, T1t, params["D"].reshape(-1))


# ----------------------------------------------------------------------------
# Deterministic synthetic parameter init (shapes follow S42DLayer.__init__)
# ----------------------------------------------------------------------------
def init_params(key, d_model, n):
    def cplx(k, shape, scale):
        kr, ki = jax.random.split(k)
        return (scale * jax.random.normal(kr, shape)
                + 1j * scale * jax.random.normal(ki, shape)).astype(jnp.complex64)

    xav = float(np.sqrt(2.0 / (d_model + n)) / np.sqrt(2.0))         # xavier-ish per component
    keys = jax.random.split(key, 12)
    params = {}
    for di, sub in enumerate([keys[:6], keys[6:12]]):
        k0, k1, k2, k3, k4, k5 = sub
        p = cplx(k0, (n,), 1.0)
        q = cplx(k1, (n,), 1.0)
        lam_re = -(0.5 + jax.random.uniform(k2, (n,), jnp.float32))
        lam_im = jnp.pi * jnp.arange(n, dtype=jnp.float32)
        lam = (lam_re + 1j * lam_im).astype(jnp.complex64).reshape(1, 1, n)
        B = cplx(k3, (d_model, n), xav)
        Ct = cplx(k4, (d_model, n), xav)
        log_step = (jax.random.uniform(k5, (d_model,), jnp.float32)
                    * (np.log(0.1) - np.log(0.001)) + np.log(0.001))
        params[f"d{di}"] = dict(p=p, q=q, lam=lam, B=B, Ct=Ct, log_step=log_step)
    params["D"] = jnp.ones((1, 1, 1, d_model), jnp.float32)
    return params


# ----------------------------------------------------------------------------
# FFT reference (mirrors torch _non_circular_convolution_2d) for a sanity check
# ----------------------------------------------------------------------------
def _fft_reference(u, k0, k1, D):
    B_, H, W, C = u.shape
    K = k0[:, :, None] * k1[:, None, :]                              # (C, H, W)
    up = jnp.pad(u, ((0, 0), (0, H), (0, W), (0, 0)))
    ud = jnp.fft.rfft2(up, axes=(1, 2))                              # (B, 2H, W+1, C)
    Kp = jnp.pad(K, ((0, 0), (0, H), (0, W)))
    Kd = jnp.fft.rfft2(Kp, axes=(-2, -1))                            # (C, 2H, W+1)
    prod = jnp.transpose(ud, (0, 3, 1, 2)) * Kd[None]
    y = jnp.fft.irfft2(prod, axes=(-2, -1))[..., :H, :W]             # (B, C, H, W)
    return jnp.transpose(y, (0, 2, 3, 1)) + D * u


if __name__ == "__main__":
    B_, H, W, C = 2, 16, 16, 4       # u: [BATCH, HEIGHT, WIDTH, D_MODEL]
    n = 8                            # state size
    key = jax.random.PRNGKey(0)
    pkey, ukey = jax.random.split(key)
    params = init_params(pkey, d_model=C, n=n)
    u = jax.random.normal(ukey, (B_, H, W, C), jnp.float32)

    fwd = jax.jit(functools.partial(s42d_forward, seq_shape=(H, W)))
    out = jax.block_until_ready(fwd(params, u))
    assert out.shape == (B_, H, W, C) and out.dtype == jnp.float32

    # Sanity check against the FFT-based path used by the torch module.
    # Tolerance is set for bf16 MXU operands (f32 accumulation); a real bug (wrong
    # transpose / Toeplitz) would produce O(scale) errors, far above this.
    k0 = _compute_kernel_1d(l=H, **params["d0"])
    k1 = _compute_kernel_1d(l=W, **params["d1"])
    ref = _fft_reference(u, k0, k1, params["D"])
    err = float(jnp.max(jnp.abs(out - ref)))
    scale = float(jnp.max(jnp.abs(ref)))
    assert err <= 2e-2 * (scale + 1.0), (err, scale)

    print("KERNEL_OK")
</pallas_src>

<mosaic_0001>
module attributes {stable_mosaic.version = 11 : i64} {
  func.func @_s42d_conv_kernel(%arg0: i32, %arg1: memref<4xf32, #tpu.memory_space<smem>>, %arg2: memref<2x16x32xbf16, #tpu.memory_space<vmem>>, %arg3: memref<2x16x16xbf16, #tpu.memory_space<vmem>>, %arg4: memref<2x32x32xbf16, #tpu.memory_space<vmem>>, %arg5: memref<2x16x32xf32, #tpu.memory_space<vmem>>) attributes {dimension_semantics = [#tpu.dimension_semantics<parallel>], iteration_bounds = array<i64: 2>, scalar_prefetch = 0 : i64, scratch_operands = 0 : i64, tpu.core_type = #tpu.core_type<tc>, window_params = [{transform_indices = @transform_0, window_bounds = array<i64: 4>}, {transform_indices = @transform_1, window_bounds = array<i64: 2, 16, 32>}, {transform_indices = @transform_2, window_bounds = array<i64: 2, 16, 16>}, {transform_indices = @transform_3, window_bounds = array<i64: 2, 32, 32>}, {transform_indices = @transform_4, window_bounds = array<i64: 2, 16, 32>}]} {
    %c2_i32 = arith.constant 2 : i32
    %0 = arith.muli %arg0, %c2_i32 : i32
    %c0_i32 = arith.constant 0 : i32
    %1 = arith.addi %0, %c0_i32 : i32
    %2 = arith.index_cast %1 : i32 to index
    %3 = memref.load %arg1[%2] : memref<4xf32, #tpu.memory_space<smem>>
    %c0 = arith.constant 0 : index
    %c0_0 = arith.constant 0 : index
    %c0_1 = arith.constant 0 : index
    %4 = vector.load %arg2[%c0, %c0_0, %c0_1] : memref<2x16x32xbf16, #tpu.memory_space<vmem>>, vector<1x16x32xbf16>
    %5 = vector.shape_cast %4 : vector<1x16x32xbf16> to vector<16x32xbf16>
    %c0_2 = arith.constant 0 : index
    %c0_3 = arith.constant 0 : index
    %c0_4 = arith.constant 0 : index
    %6 = vector.load %arg3[%c0_2, %c0_3, %c0_4] : memref<2x16x16xbf16, #tpu.memory_space<vmem>>, vector<1x16x16xbf16>
    %7 = vector.shape_cast %6 : vector<1x16x16xbf16> to vector<16x16xbf16>
    %cst = arith.constant dense<0.000000e+00> : vector<16x32xf32>
    %8 = tpu.matmul %7, %5, %cst {dimension_numbers = #tpu.dot_dimension_numbers<[1], [0], [0], [1], [0, 0, 1, 1], [], []>} : vector<16x16xbf16>, vector<16x32xbf16>, vector<16x32xf32> -> vector<16x32xf32>
    %9 = arith.truncf %8 : vector<16x32xf32> to vector<16x32xbf16>
    %c0_5 = arith.constant 0 : index
    %c0_6 = arith.constant 0 : index
    %c0_7 = arith.constant 0 : index
    %10 = vector.load %arg4[%c0_5, %c0_6, %c0_7] : memref<2x32x32xbf16, #tpu.memory_space<vmem>>, vector<1x32x32xbf16>
    %11 = vector.shape_cast %10 : vector<1x32x32xbf16> to vector<32x32xbf16>
    %cst_8 = arith.constant dense<0.000000e+00> : vector<16x32xf32>
    %12 = tpu.matmul %9, %11, %cst_8 {dimension_numbers = #tpu.dot_dimension_numbers<[1], [0], [0], [1], [0, 0, 1, 1], [], []>} : vector<16x32xbf16>, vector<32x32xbf16>, vector<16x32xf32> -> vector<16x32xf32>
    %13 = arith.extf %5 : vector<16x32xbf16> to vector<16x32xf32>
    %14 = vector.broadcast %3 : f32 to vector<16x32xf32>
    %15 = arith.mulf %14, %13 : vector<16x32xf32>
    %16 = arith.addf %12, %15 : vector<16x32xf32>
    %c0_9 = arith.constant 0 : index
    %c0_10 = arith.constant 0 : index
    %c0_11 = arith.constant 0 : index
    %17 = vector.load %arg5[%c0_9, %c0_10, %c0_11] : memref<2x16x32xf32, #tpu.memory_space<vmem>>, vector<1x16x32xf32>
    %18 = vector.shape_cast %17 : vector<1x16x32xf32> to vector<16x32xf32>
    %19 = vector.shape_cast %16 : vector<16x32xf32> to vector<1x16x32xf32>
    tpu.vector_store %arg5[%c0_9, %c0_10, %c0_11], %19 {strides = array<i32>} : memref<2x16x32xf32, #tpu.memory_space<vmem>>, vector<1x16x32xf32>,
    %c2_i32_12 = arith.constant 2 : i32
    %20 = arith.muli %arg0, %c2_i32_12 : i32
    %c1_i32 = arith.constant 1 : i32
    %21 = arith.addi %20, %c1_i32 : i32
    %22 = arith.index_cast %21 : i32 to index
    %23 = memref.load %arg1[%22] : memref<4xf32, #tpu.memory_space<smem>>
    %c1 = arith.constant 1 : index
    %c0_13 = arith.constant 0 : index
    %c0_14 = arith.constant 0 : index
    %24 = vector.load %arg2[%c1, %c0_13, %c0_14] : memref<2x16x32xbf16, #tpu.memory_space<vmem>>, vector<1x16x32xbf16>
    %25 = vector.shape_cast %24 : vector<1x16x32xbf16> to vector<16x32xbf16>
    %c1_15 = arith.constant 1 : index
    %c0_16 = arith.constant 0 : index
    %c0_17 = arith.constant 0 : index
    %26 = vector.load %arg3[%c1_15, %c0_16, %c0_17] : memref<2x16x16xbf16, #tpu.memory_space<vmem>>, vector<1x16x16xbf16>
    %27 = vector.shape_cast %26 : vector<1x16x16xbf16> to vector<16x16xbf16>
    %cst_18 = arith.constant dense<0.000000e+00> : vector<16x32xf32>
    %28 = tpu.matmul %27, %25, %cst_18 {dimension_numbers = #tpu.dot_dimension_numbers<[1], [0], [0], [1], [0, 0, 1, 1], [], []>} : vector<16x16xbf16>, vector<16x32xbf16>, vector<16x32xf32> -> vector<16x32xf32>
    %29 = arith.truncf %28 : vector<16x32xf32> to vector<16x32xbf16>
    %c1_19 = arith.constant 1 : index
    %c0_20 = arith.constant 0 : index
    %c0_21 = arith.constant 0 : index
    %30 = vector.load %arg4[%c1_19, %c0_20, %c0_21] : memref<2x32x32xbf16, #tpu.memory_space<vmem>>, vector<1x32x32xbf16>
    %31 = vector.shape_cast %30 : vector<1x32x32xbf16> to vector<32x32xbf16>
    %cst_22 = arith.constant dense<0.000000e+00> : vector<16x32xf32>
    %32 = tpu.matmul %29, %31, %cst_22 {dimension_numbers = #tpu.dot_dimension_numbers<[1], [0], [0], [1], [0, 0, 1, 1], [], []>} : vector<16x32xbf16>, vector<32x32xbf16>, vector<16x32xf32> -> vector<16x32xf32>
    %33 = arith.extf %25 : vector<16x32xbf16> to vector<16x32xf32>
    %34 = vector.broadcast %23 : f32 to vector<16x32xf32>
    %35 = arith.mulf %34, %33 : vector<16x32xf32>
    %36 = arith.addf %32, %35 : vector<16x32xf32>
    %c1_23 = arith.constant 1 : index
    %c0_24 = arith.constant 0 : index
    %c0_25 = arith.constant 0 : index
    %37 = vector.load %arg5[%c1_23, %c0_24, %c0_25] : memref<2x16x32xf32, #tpu.memory_space<vmem>>, vector<1x16x32xf32>
    %38 = vector.shape_cast %37 : vector<1x16x32xf32> to vector<16x32xf32>
    %39 = vector.shape_cast %36 : vector<16x32xf32> to vector<1x16x32xf32>
    tpu.vector_store %arg5[%c1_23, %c0_24, %c0_25], %39 {strides = array<i32>} : memref<2x16x32xf32, #tpu.memory_space<vmem>>, vector<1x16x32xf32>,
    return
  }
  func.func @transform_0(%arg0: i32) -> i32 {
    %c0_i32 = arith.constant 0 : i32
    %c0_i32_0 = arith.constant 0 : i32
    return %c0_i32 : i32
  }
  func.func @transform_1(%arg0: i32) -> (i32, i32, i32) {
    %c0_i32 = arith.constant 0 : i32
    %c0_i32_0 = arith.constant 0 : i32
    %c0_i32_1 = arith.constant 0 : i32
    return %arg0, %c0_i32, %c0_i32_0 : i32, i32, i32
  }
  func.func @transform_2(%arg0: i32) -> (i32, i32, i32) {
    %c0_i32 = arith.constant 0 : i32
    %c0_i32_0 = arith.constant 0 : i32
    %c0_i32_1 = arith.constant 0 : i32
    return %arg0, %c0_i32, %c0_i32_0 : i32, i32, i32
  }
  func.func @transform_3(%arg0: i32) -> (i32, i32, i32) {
    %c0_i32 = arith.constant 0 : i32
    %c0_i32_0 = arith.constant 0 : i32
    %c0_i32_1 = arith.constant 0 : i32
    return %arg0, %c0_i32, %c0_i32_0 : i32, i32, i32
  }
  func.func @transform_4(%arg0: i32) -> (i32, i32, i32) {
    %c0_i32 = arith.constant 0 : i32
    %c0_i32_0 = arith.constant 0 : i32
    %c0_i32_1 = arith.constant 0 : i32
    return %arg0, %c0_i32, %c0_i32_0 : i32, i32, i32
  }
}

</mosaic_0001>

<bundles_post_ra>
// kernel: custom-call.16
= control target key start
LH: loop header
LB: loop body
LE: loop exit
PB: predicated region body
PF: predicated region fallthrough
CT: control target
= control target key end

     0   :  { %2 = vsyncpa [#allocation0], 0  ;;  %s47_s0 = inlined_call_operand.hbm [shape: c64[8], index: 0, kind: input, shape index: {}]   ;;  %s48_s1 = inlined_call_operand.vmem [shape: f32[8], index: 1, kind: output, shape index: {}]  }
   0x1   :  { %s3_s8 = sshll.u32 %s48_s1, 4  ;;  %s4_s8 = int_to_ptr.vmem [resolvable:$true] %s3_s8 }
   0x2   :  { %s17_s9 = scalar_lea.vmem %s4_s8, 16  ;;  %p22_p1 = scmp.lt.s32.totalorder %s4_s8, %s4_s8 }
   0x3   :  { %p18_p0 = scmp.ne.s32.totalorder %s4_s8, %s17_s9  ;;  %p23_p2 = scmp.lt.s32.totalorder %s17_s9, %s17_s9 }
   0x5   :  { %p24_p3 = por %p23_p2, %p22_p1 }
   0x7   :  { %p25_p4 = pnand %p24_p3, %p18_p0 }
   0x9   :  { %28 = shalt.err (!%p25_p4)  }
   0xa   :  { %6 = dma.hbm_to_vmem [thread:$0]  %s47_s0, 16, %s4_s8, [#allocation0] }
   0xb   :  { %29 = dma.done.wait [#allocation0], 16  }
   0xc   :  { %30 = vsyncadd [#allocation0], 4294967280 }
   0xd   :  { %8 = vsyncpa [#allocation0], 1 }

// kernel: custom-call.10
= control target key start
LH: loop header
LB: loop body
LE: loop exit
PB: predicated region body
PF: predicated region fallthrough
CT: control target
= control target key end

     0   :  { %2 = vsyncpa [#allocation0], 0  ;;  %s47_s0 = inlined_call_operand.hbm [shape: c64[4,8], index: 0, kind: input, shape index: {}]   ;;  %s48_s1 = inlined_call_operand.vmem [shape: f32[4,8], index: 1, kind: output, shape index: {}]  }
   0x1   :  { %s3_s8 = sshll.u32 %s48_s1, 4  ;;  %s4_s8 = int_to_ptr.vmem [resolvable:$true] %s3_s8 }
   0x2   :  { %s17_s9 = scalar_lea.vmem %s4_s8, 64  ;;  %p22_p1 = scmp.lt.s32.totalorder %s4_s8, %s4_s8 }
   0x3   :  { %p18_p0 = scmp.ne.s32.totalorder %s4_s8, %s17_s9  ;;  %p23_p2 = scmp.lt.s32.totalorder %s17_s9, %s17_s9 }
   0x5   :  { %p24_p3 = por %p23_p2, %p22_p1 }
   0x7   :  { %p25_p4 = pnand %p24_p3, %p18_p0 }
   0x9   :  { %28 = shalt.err (!%p25_p4)  }
   0xa   :  { %6 = dma.hbm_to_vmem [thread:$0]  %s47_s0, 64, %s4_s8, [#allocation0] }
   0xb   :  { %29 = dma.done.wait [#allocation0], 64  }
   0xc   :  { %30 = vsyncadd [#allocation0], 4294967232 }
   0xd   :  { %8 = vsyncpa [#allocation0], 1 }

// kernel: custom-call.19
= control target key start
LH: loop header
LB: loop body
LE: loop exit
PB: predicated region body
PF: predicated region fallthrough
CT: control target
= control target key end

     0   :  { %s51_s0 = inlined_call_operand.hbm [shape: c64[8], index: 0, kind: input, shape index: {}]   ;;  %s52_s1 = inlined_call_operand.vmem [shape: f32[8], index: 1, kind: output, shape index: {}]  }
   0x1   :  { %s2_s8 = scalar_lea.hbm %s51_s0, 16 }
   0x2   :  { %3 = vsyncpa [#allocation0], 0  ;;  %s4_s11 = sshll.u32 %s52_s1, 4  ;;  %s5_s11 = int_to_ptr.vmem [resolvable:$true] %s4_s11 }
   0x3   :  { %s20_s12 = scalar_lea.vmem %s5_s11, 16  ;;  %p25_p1 = scmp.lt.s32.totalorder %s5_s11, %s5_s11 }
   0x4   :  { %p21_p0 = scmp.ne.s32.totalorder %s5_s11, %s20_s12  ;;  %p26_p2 = scmp.lt.s32.totalorder %s20_s12, %s20_s12 }
   0x6   :  { %p27_p3 = por %p26_p2, %p25_p1 }
   0x8   :  { %p28_p4 = pnand %p27_p3, %p21_p0 }
   0xa   :  { %31 = shalt.err (!%p28_p4)  }
   0xb   :  { %7 = dma.hbm_to_vmem [thread:$0]  %s2_s8, 16, %s5_s11, [#allocation0] }
   0xc   :  { %33 = dma.done.wait [#allocation0], 16  }
   0xd   :  { %34 = vsyncadd [#allocation0], 4294967280 }
   0xe   :  { %9 = vsyncpa [#allocation0], 1 }

// kernel: neg.7
= control target key start
LH: loop header
LB: loop body
LE: loop exit
PB: predicated region body
PF: predicated region fallthrough
CT: control target
= control target key end

     0   :  { %s24_s0 = inlined_call_operand.vmem [shape: f32[8], index: 0, kind: input, shape index: {}]   ;;  %s25_s1 = inlined_call_operand.vmem [shape: f32[8], index: 1, kind: output, shape index: {}]  }
   0x1   :  { %v2_v0 = vld [vmem:[%s24_s0] sm:$0x1] }
   0x2   :  { %v5_v1 = vxor.u32 2147483648, %v2_v0 }
   0x4   :  { %7 = vst [vmem:[%s25_s1] sm:$0x1] %v5_v1 }

// kernel: custom-call.11
= control target key start
LH: loop header
LB: loop body
LE: loop exit
PB: predicated region body
PF: predicated region fallthrough
CT: control target
= control target key end

     0   :  { %s51_s0 = inlined_call_operand.hbm [shape: c64[4,8], index: 0, kind: input, shape index: {}]   ;;  %s52_s1 = inlined_call_operand.vmem [shape: f32[4,8], index: 1, kind: output, shape index: {}]  }
   0x1   :  { %s2_s8 = scalar_lea.hbm %s51_s0, 64 }
   0x2   :  { %3 = vsyncpa [#allocation0], 0  ;;  %s4_s11 = sshll.u32 %s52_s1, 4  ;;  %s5_s11 = int_to_ptr.vmem [resolvable:$true] %s4_s11 }
   0x3   :  { %s20_s12 = scalar_lea.vmem %s5_s11, 64  ;;  %p25_p1 = scmp.lt.s32.totalorder %s5_s11, %s5_s11 }
   0x4   :  { %p21_p0 = scmp.ne.s32.totalorder %s5_s11, %s20_s12  ;;  %p26_p2 = scmp.lt.s32.totalorder %s20_s12, %s20_s12 }
   0x6   :  { %p27_p3 = por %p26_p2, %p25_p1 }
   0x8   :  { %p28_p4 = pnand %p27_p3, %p21_p0 }
   0xa   :  { %31 = shalt.err (!%p28_p4)  }
   0xb   :  { %7 = dma.hbm_to_vmem [thread:$0]  %s2_s8, 64, %s5_s11, [#allocation0] }
   0xc   :  { %33 = dma.done.wait [#allocation0], 64  }
   0xd   :  { %34 = vsyncadd [#allocation0], 4294967232 }
   0xe   :  { %9 = vsyncpa [#allocation0], 1 }

// kernel: custom-call.15
= control target key start
LH: loop header
LB: loop body
LE: loop exit
PB: predicated region body
PF: predicated region fallthrough
CT: control target
= control target key end

     0   :  { %s51_s0 = inlined_call_operand.hbm [shape: c64[1,1,8], index: 0, kind: input, shape index: {}]   ;;  %s52_s1 = inlined_call_operand.vmem [shape: f32[1,1,8], index: 1, kind: output, shape index: {}]  }
   0x1   :  { %s2_s8 = scalar_lea.hbm %s51_s0, 16 }
   0x2   :  { %3 = vsyncpa [#allocation0], 0  ;;  %s4_s11 = sshll.u32 %s52_s1, 4  ;;  %s5_s11 = int_to_ptr.vmem [resolvable:$true] %s4_s11 }
   0x3   :  { %s20_s12 = scalar_lea.vmem %s5_s11, 16  ;;  %p25_p1 = scmp.lt.s32.totalorder %s5_s11, %s5_s11 }
   0x4   :  { %p21_p0 = scmp.ne.s32.totalorder %s5_s11, %s20_s12  ;;  %p26_p2 = scmp.lt.s32.totalorder %s20_s12, %s20_s12 }
   0x6   :  { %p27_p3 = por %p26_p2, %p25_p1 }
   0x8   :  { %p28_p4 = pnand %p27_p3, %p21_p0 }
   0xa   :  { %31 = shalt.err (!%p28_p4)  }
   0xb   :  { %7 = dma.hbm_to_vmem [thread:$0]  %s2_s8, 16, %s5_s11, [#allocation0] }
   0xc   :  { %33 = dma.done.wait [#allocation0], 16  }
   0xd   :  { %34 = vsyncadd [#allocation0], 4294967280 }
   0xe   :  { %9 = vsyncpa [#allocation0], 1 }

// kernel: custom-call.14
= control target key start
LH: loop header
LB: loop body
LE: loop exit
PB: predicated region body
PF: predicated region fallthrough
CT: control target
= control target key end

     0   :  { %2 = vsyncpa [#allocation0], 0  ;;  %s47_s0 = inlined_call_operand.hbm [shape: c64[1,1,8], index: 0, kind: input, shape index: {}]   ;;  %s48_s1 = inlined_call_operand.vmem [shape: f32[1,1,8], index: 1, kind: output, shape index: {}]  }
   0x1   :  { %s3_s8 = sshll.u32 %s48_s1, 4  ;;  %s4_s8 = int_to_ptr.vmem [resolvable:$true] %s3_s8 }
   0x2   :  { %s17_s9 = scalar_lea.vmem %s4_s8, 16  ;;  %p22_p1 = scmp.lt.s32.totalorder %s4_s8, %s4_s8 }
   0x3   :  { %p18_p0 = scmp.ne.s32.totalorder %s4_s8, %s17_s9  ;;  %p23_p2 = scmp.lt.s32.totalorder %s17_s9, %s17_s9 }
   0x5   :  { %p24_p3 = por %p23_p2, %p22_p1 }
   0x7   :  { %p25_p4 = pnand %p24_p3, %p18_p0 }
   0x9   :  { %28 = shalt.err (!%p25_p4)  }
   0xa   :  { %6 = dma.hbm_to_vmem [thread:$0]  %s47_s0, 16, %s4_s8, [#allocation0] }
   0xb   :  { %29 = dma.done.wait [#allocation0], 16  }
   0xc   :  { %30 = vsyncadd [#allocation0], 4294967280 }
   0xd   :  { %8 = vsyncpa [#allocation0], 1 }

// kernel: s42d_forward.1
= control target key start
LH: loop header
LB: loop body
LE: loop exit
PB: predicated region body
PF: predicated region fallthrough
CT: control target
= control target key end

     0   :  { %9 = vsyncpa [#allocation3], 0  ;;  %s801_s15 = smov 0   ;;  %s869_s0 = inlined_call_operand.vmem [shape: f32[4], index: 0, kind: input, shape index: {}]   ;;  %s870_s1 = inlined_call_operand.vmem [shape: bf16[4,16,32], index: 1, kind: input, shape index: {}]   ;;  %s871_s2 = inlined_call_operand.vmem [shape: bf16[4,16,16], index: 2, kind: input, shape index: {}]   ;;  %s872_s3 = inlined_call_operand.vmem [shape: bf16[4,32,32], index: 3, kind: input, shape index: {}]   ;;  %s873_s4 = inlined_call_operand.vmem [shape: f32[4,16,32], index: 4, kind: output, shape index: {}]  }
   0x1 LB: > { %s629_s16 = sadd.s32 4294967295, %s771_s15   ;;  %p631_p0 = scmp.ge.s32.totalorder %s771_s15, 1  ;;  %s771_s15 = sphi %s801_s15, %s15_s15  }
   0x2   : > { %p145_p1 = scmp.lt.s32.totalorder %s771_s15, 3  ;;  %s158_s19 = sshll.u32 %s869_s0, 4  ;;  %s159_s19 = int_to_ptr.vmem [resolvable:$true] %s158_s19 }
   0x3   : > { %p816_p3 = scmp.eq.s32.totalorder %s629_s16, 0  ;;  %s746_s22 = scalar_lea.vmem %s159_s19, 16 }
   0x4   : > { %p812_p2 = pnand %p631_p0, %p145_p1  ;;  %p747_p6 = scmp.ne.s32.totalorder %s159_s19, %s746_s22 }
   0x5   : > { %p754_p10 = scmp.lt.s32.totalorder %s159_s19, %s159_s19  ;;  %p755_p11 = scmp.lt.s32.totalorder %s746_s22, %s746_s22 }
   0x6   : > { %p719_p4 = pneg %p812_p2 }
   0x7   : > { %p756_p12 = por %p755_p11, %p754_p10 }
   0x8   : > { %p720_p5 = pnand %p816_p3, %p719_p4 }
   0xa   : > { %p748_p7 = pneg %p720_p5 }
   0xc   : > { %p749_p8 = pnand %p748_p7, %p747_p6 }
   0xe   : > { %p750_p9 = pneg %p749_p8 }
  0x10   : > { %p757_p13 = pnand %p756_p12, %p750_p9 }
  0x12   : > { %760 = shalt.err (!%p757_p13)
}
  0x13   : > { %s773_s23 = smov [#allocation2]   ;;  %201 = sbr.rel (%p812_p2) target bundleno = 445 (0x1bd), region = 36 }
  0x14   : > { %722 = dma.vmem_to_smem (!%p720_p5), %s159_s19, 16, %s773_s23, [#allocation3]  }
  0x18   : > { %766 = dma.done.wait (%p816_p3), [#allocation3], 16  }
  0x19   : > { %768 = vsyncadd (%p816_p3), [#allocation3], 4294967280 }
  0x1a   : > { %207 = sfence }
  0x1b   : > { %s830_s24 = sshll.u32 %s629_s16, 1  ;;  %v774_v0 = vmov 0.0   ;;  %vm775_vm0 = vmmov 0   ;;  %vm288_vm1 = vcmask 130048   ;;  %vm355_vm2 = vcmask 261120  }
  0x1c   : > { %687 = vmatprep.subr.bf16.mxu0 %v774_v0  ;;  %p243_p0 = scmp.lt.s32.totalorder %s830_s24, 3  ;;  %689 = vmatprep.mubr.msk.bf16.mxu0 %vm775_vm0, %v774_v0  ;;  %s272_s11 = sld [smem:[#allocation2 + %s830_s24]] }
  0x1d   : > { %693 = vmatprep.subr.bf16.mxu1 %v774_v0  ;;  %697 = vmatprep.mubr.msk.bf16.mxu1 %vm775_vm0, %v774_v0  ;;  %s402_s12 = sadd.s32 1, %s830_s24 }
  0x1e   : > { %s836_s25 = scalar_select %p243_p0, %s830_s24, 3 }
  0x1f   : > { %s403_s13 = sld [smem:[#allocation2 + %s402_s12]] }
  0x20   : > { %s673_s26 = sshll.u32 %s836_s25, 3  ;;  %s675_s27 = sshll.u32 %s836_s25, 4 }
  0x21   : > { %s247_s30 = scalar_lea.vmem %s870_s1, %s673_s26  ;;  %s254_s7 = scalar_lea.vmem %s871_s2, %s673_s26 }
  0x22   : > { %v273_v1 = vld [vmem:[%s247_s30] sm:$0xff]   ;;  %s261_s10 = scalar_lea.vmem %s872_s3, %s675_s27  ;;  %v655_v3 = vld [vmem:[%s247_s30 + $0x8] sm:$0xff]   ;;  %v340_v20 = vstv %s272_s11  ;;  %s268_s17 = scalar_lea.vmem %s873_s4, %s675_s27 }
  0x23   : > { %v737_v2 = vld [vmem:[%s254_s7] sm:$0xff]   ;;  %688 = vmatpush3.bf16.msra.mxu0 %v273_v1  ;;  %v739_v4 = vld [vmem:[%s254_s7 + $0x8] sm:$0xff]   ;;  %v742_v10 = vld [vmem:[%s261_s10 + $0x18] sm:$0xff]   ;;  %v338_v19 = vunpack.c.l.bf16 %v273_v1  ;;  %v339_v21 = vunpack.c.h.bf16 %v273_v1  ;;  %v471_v26 = vunpack.c.l.bf16 %v655_v3  ;;  %v472_v32 = vunpack.c.h.bf16 %v655_v3 }
  0x24   : > { %701 = vmatprep.subr.bf16.mxu0 %v774_v0  ;;  %v740_v5 = vld [vmem:[%s261_s10 + $0x8] sm:$0xff]   ;;  %v741_v6 = vld [vmem:[%s261_s10] sm:$0xff]   ;;  %v743_v14 = vld [vmem:[%s261_s10 + $0x10] sm:$0xff]  }
  0x25   : > { %694 = vmatpush3.bf16.msra.mxu1 %v740_v5  ;;  %v341_v22 = vmul.f32 %v340_v20, %v338_v19  ;;  %v342_v25 = vmul.f32 %v340_v20, %v339_v21  ;;  %v473_v28 = vstv %s403_s13 }
  0x26   : > { %690 = vmatmul.mubr.msk.bf16.vlgmr.msra.gmra.mxu0 %vm288_vm1, %v737_v2  ;;  %695 = vmatprep.subr.bf16.mxu1 %v774_v0  ;;  %v474_v31 = vmul.f32 %v473_v28, %v471_v26  ;;  %v475_v36 = vmul.f32 %v473_v28, %v472_v32 }
  0x27   : > { %702 = vmatpush3.bf16.msra.mxu0 %v655_v3  ;;  %703 = vmatprep.mubr.msk.bf16.mxu0 %vm775_vm0, %v774_v0 }
  0x29   : > { %696 = vmatpush3.bf16.msra.mxu1 %v741_v6 }
  0x2a   : > { %707 = vmatprep.subr.bf16.mxu1 %v774_v0 }
  0x2e   : > { %704 = vmatmul.mubr.msk.bf16.vlgmr.msra.gmra.mxu0 %vm288_vm1, %v739_v4 }
  0xe6   : > { %v326_v7 = vpop.f32.mrf.mxu0 }
  0xe8   : > { %v691_v8 = vpop.f32.mrf.mxu0 }
  0xea   : > { %v329_v9 = vpop.f32.mrf.mxu0 }
  0xeb   : > { %v333_v11 = vpack.c.bf16 %v329_v9, %v326_v7 }
  0xec   : > { %v692_v12 = vpop.f32.mrf.mxu0 }
  0xed   : > { %698 = vmatmul.mubr.msk.bf16.vlgmr.msra.gmra.mxu1 %vm355_vm2, %v333_v11 }
  0xee   : > { %v458_v13 = vpop.f32.mrf.mxu0  ;;  %708 = vmatpush3.bf16.msra.mxu1 %v742_v10  ;;  %711 = vmatprep.mubr.msk.bf16.mxu1 %vm775_vm0, %v774_v0 }
  0xef   : > { %709 = vmatprep.subr.bf16.mxu1 %v774_v0 }
  0xf0   : > { %v705_v15 = vpop.f32.mrf.mxu0 }
  0xf2   : > { %v461_v16 = vpop.f32.mrf.mxu0  ;;  %710 = vmatpush3.bf16.msra.mxu1 %v743_v14 }
  0xf3   : > { %v465_v17 = vpack.c.bf16 %v461_v16, %v458_v13 }
  0xf4   : > { %v706_v18 = vpop.f32.mrf.mxu0 }
  0xf5   : > { %712 = vmatmul.mubr.msk.bf16.vlgmr.msra.gmra.mxu1 %vm355_vm2, %v465_v17 }
 0x1ad   : > { %v393_v23 = vpop.f32.mrf.mxu1 }
 0x1ae   : > { %v394_v24 = vadd.f32 %v393_v23, %v341_v22 }
 0x1af   : > { %v699_v27 = vpop.f32.mrf.mxu1 }
 0x1b0   : > { %400 = vst.msk [vmem:[%s268_s17] sm:$0xff] %vm355_vm2, %v394_v24 }
 0x1b1   : > { %v396_v29 = vpop.f32.mrf.mxu1 }
 0x1b2   : > { %v397_v30 = vadd.f32 %v396_v29, %v342_v25 }
 0x1b3   : > { %v700_v33 = vpop.f32.mrf.mxu1 }
 0x1b4   : > { %401 = vst.msk [vmem:[%s268_s17 + $0x8] sm:$0xff] %vm355_vm2, %v397_v30 }
 0x1b5   : > { %v525_v34 = vpop.f32.mrf.mxu1 }
 0x1b6   : > { %v526_v35 = vadd.f32 %v525_v34, %v474_v31 }
 0x1b7   : > { %v713_v37 = vpop.f32.mrf.mxu1 }
 0x1b8   : > { %669 = vst.msk [vmem:[%s268_s17 + $0x10] sm:$0xff] %vm355_vm2, %v526_v35 }
 0x1b9   : > { %v528_v38 = vpop.f32.mrf.mxu1 }
 0x1ba   : > { %v529_v39 = vadd.f32 %v528_v38, %v475_v36 }
 0x1bb   : > { %v714_v40 = vpop.f32.mrf.mxu1 }
 0x1bc   : > { %670 = vst.msk [vmem:[%s268_s17 + $0x18] sm:$0xff] %vm355_vm2, %v529_v39 }
 0x1bd PF: > { %s15_s15 = sadd.s32 1, %s771_s15  }
 0x1be   : > { %p12_p1 = scmp.ge.s32.totalorder %s15_s15, 4  }
 0x1c0   :  { %14 = sbr.rel (!%p12_p1) target bundleno = 1 (0x1), region = 81 }
 0x1c5   :  { %559 = vsyncpa [#allocation3], 1 }
 0x1c6   :  { %561 = vsyncpa [#allocation3 + $0x1], 1 }

</bundles_post_ra>
